<compile_context>
chip_gen: v5e
topology: v5e:2x2
jax: 0.10.0
libtpu: 0.0.40
codegen_flags: <defaults>
</compile_context>

<pallas_src>
import functools
import math

import numpy as np

import jax
import jax.numpy as jnp
from jax.experimental import pallas as pl
from jax.experimental.pallas import tpu as pltpu


def _time_embedding_kernel(t_ref, fsel_ref, phase_ref, o_ref, *, g: int):
    """One tile of the folded sinusoidal time embedding.

    t_ref:     (TR, g) f32   timesteps; g consecutive batch rows folded per
                             output row (lane-dense packing).
    fsel_ref:  (g, W)  f32   per-segment frequency rows (zero outside segment).
    phase_ref: (1, W)  f32   0 for sin columns, pi/2 for cos columns.
    o_ref:     (TR, W)       W = g*dim; row layout [seg0: sin|cos][seg1: ...].
    """
    t_tile = t_ref[...]                                  # (TR, g)

    # emb[r, col] = t[r, seg(col)] * freq(col % dim).  fsel[s] is the freq row
    # masked to segment s, so a short static mul-add chain (g <= 8, VPU) builds
    # the whole folded row; no iota / exp / select in the hot block.
    emb = t_tile[:, 0:1] * fsel_ref[0:1, :]              # (TR,1)*(1,W) -> (TR,W)
    for s in range(1, g):
        emb = emb + t_tile[:, s:s + 1] * fsel_ref[s:s + 1, :]

    # cos(x) == sin(x + pi/2): a single EUP push per output element (instead of
    # exp + sin + cos, ~3 pushes, in the previous version).
    out = jnp.sin(emb + phase_ref[...])

    # Single full-width, lane-dense store; cast-at-store only (f32 math above).
    o_ref[...] = out.astype(o_ref.dtype)


def time_embedding(t: jax.Array, dim: int, out_dtype=jnp.float32) -> jax.Array:
    """JAX wrapper mirroring TimeEmbedding.forward.

    t: (B,) timesteps.  Returns (B, dim) = concat([sin(t*f), cos(t*f)], axis=1).
    Pass out_dtype=jnp.bfloat16 when the consumer time-MLP is bf16 (halves the
    HBM writeback); the trig math is always f32.
    """
    assert dim % 2 == 0 and dim >= 4, "dim must be even and >= 4"
    half = dim // 2
    scale = math.log(10000.0) / (half - 1)
    b = int(t.shape[0])

    # ---- lane-dense fold factor -------------------------------------------
    # Pack g consecutive batch rows per stored row so W = g*dim is a multiple
    # of 128 lanes (unmasked vst).  g=1 when dim is already lane-dense.
    if dim % 128 == 0:
        g = 1
    else:
        g = 128 // math.gcd(dim, 128)
        if g > 8:
            g = 1  # TODO(synk): lane-dense packing for awkward dims (>8 segs)
    W = g * dim

    # ---- tiny constant rows (freqs per segment + phase) --------------------
    k = np.arange(half, dtype=np.float32)
    freq_half = np.exp(-np.float32(scale) * k).astype(np.float32)     # (half,)
    freq_row = np.concatenate([freq_half, freq_half])                 # (dim,)
    phase_row = np.concatenate(
        [np.zeros(half, np.float32), np.full(half, np.pi / 2, np.float32)])
    freq_full = np.tile(freq_row, g)                                  # (W,)
    phase = np.tile(phase_row, g).reshape(1, W).astype(np.float32)    # (1, W)
    seg_of_col = np.repeat(np.arange(g), dim)                         # (W,)
    fsel = np.where(seg_of_col[None, :] == np.arange(g)[:, None],
                    freq_full[None, :], 0.0).astype(np.float32)       # (g, W)

    # ---- batch tiling -------------------------------------------------------
    r = -(-b // g)                       # folded rows
    tr_cap = max(8, 512 // g)            # >= ~512 original rows per grid step
    tr = min(r, tr_cap)
    itemsize = jnp.dtype(out_dtype).itemsize
    # Keep the per-step output block <= 4 MiB so the double-buffered tile fits
    # comfortably under v7x's 32 MiB scoped-VMEM default (64 MiB physical).
    while tr > 8 and tr * W * itemsize > (4 << 20):
        tr //= 2
    if tr < r:
        tr = max(8, (tr // 8) * 8)       # tiled blocks must be sublane-aligned
    r_pad = -(-r // tr) * tr
    b_pad = r_pad * g

    t_f32 = t.astype(jnp.float32).reshape(b)
    if b_pad != b:
        t_f32 = jnp.pad(t_f32, (0, b_pad - b))
    t2d = t_f32.reshape(r_pad, g)

    kernel = functools.partial(_time_embedding_kernel, g=g)

    out = pl.pallas_call(
        kernel,
        out_shape=jax.ShapeDtypeStruct((r_pad, W), out_dtype),
        grid_spec=pl.GridSpec(
            grid=(r_pad // tr,),
            in_specs=[
                pl.BlockSpec((tr, g), lambda i: (i, 0)),
                pl.BlockSpec((g, W), lambda i: (0, 0)),   # constant block
                pl.BlockSpec((1, W), lambda i: (0, 0)),   # constant block
            ],
            out_specs=pl.BlockSpec((tr, W), lambda i: (i, 0)),
        ),
        compiler_params=pltpu.CompilerParams(
            dimension_semantics=("parallel",),
        ),
    )(t2d, jnp.asarray(fsel), jnp.asarray(phase))

    # Free row-major unfold back to (B, dim); drop padded tail rows.
    out = out.reshape(r_pad * g, dim)[:b]
    return out


def _reference(t: jax.Array, dim: int) -> jax.Array:
    half_dim = dim // 2
    scale = math.log(10000.0) / (half_dim - 1)
    freqs = jnp.exp(jnp.arange(half_dim, dtype=jnp.float32) * -scale)
    emb = t.astype(jnp.float32)[:, None] * freqs[None, :]
    return jnp.concatenate([jnp.sin(emb), jnp.cos(emb)], axis=1)


if __name__ == "__main__":
    key = jax.random.PRNGKey(0)
    batch = 2
    dim = 32  # even embedding dimension, small shape consistent with module

    # Deterministic example timesteps (diffusion step indices as floats).
    t = jax.random.randint(key, (batch,), 0, 1000).astype(jnp.float32)

    out = time_embedding(t, dim)
    jax.block_until_ready(out)
    ref = _reference(t, dim)
    assert out.shape == (batch, dim)
    # cos(x)=sin(x+pi/2) adds up to ~ulp(t)/2 argument rounding for t ~ 1e3,
    # so compare at 2e-4 (outputs are O(1)).
    assert jnp.allclose(out, ref, atol=2e-4, rtol=1e-5), float(
        jnp.max(jnp.abs(out - ref)))

    # Multi-block / padded path (grid > 1, B not a multiple of the fold).
    key2 = jax.random.PRNGKey(0)
    t_big = jax.random.randint(key2, (1030,), 0, 1000).astype(jnp.float32)
    out_big = time_embedding(t_big, dim)
    jax.block_until_ready(out_big)
    assert out_big.shape == (1030, dim)
    assert jnp.allclose(out_big, _reference(t_big, dim), atol=2e-4, rtol=1e-5)

    # bf16 output path (cast-at-store only; math stays f32).
    out_bf16 = time_embedding(t, dim, out_dtype=jnp.bfloat16)
    jax.block_until_ready(out_bf16)
    assert jnp.allclose(out_bf16.astype(jnp.float32), ref, atol=2e-2, rtol=2e-2)

    print("KERNEL_OK")
</pallas_src>

<mosaic_0001>
module attributes {stable_mosaic.version = 11 : i64} {
  func.func @_time_embedding_kernel(%arg0: i32, %arg1: memref<1x4xf32, #tpu.memory_space<vmem>>, %arg2: memref<4x128xf32, #tpu.memory_space<vmem>>, %arg3: memref<1x128xf32, #tpu.memory_space<vmem>>, %arg4: memref<1x128xf32, #tpu.memory_space<vmem>>) attributes {dimension_semantics = [#tpu.dimension_semantics<parallel>], iteration_bounds = array<i64: 1>, scalar_prefetch = 0 : i64, scratch_operands = 0 : i64, tpu.core_type = #tpu.core_type<tc>, window_params = [{transform_indices = @transform_0, window_bounds = array<i64: 1, 4>}, {pipeline_mode = #tpu.pipeline_mode<synchronous>, transform_indices = @transform_1, window_bounds = array<i64: 4, 128>}, {pipeline_mode = #tpu.pipeline_mode<synchronous>, transform_indices = @transform_2, window_bounds = array<i64: 1, 128>}, {transform_indices = @transform_3, window_bounds = array<i64: 1, 128>}]} {
    %c0 = arith.constant 0 : index
    %c0_0 = arith.constant 0 : index
    %0 = vector.load %arg1[%c0, %c0_0] : memref<1x4xf32, #tpu.memory_space<vmem>>, vector<1x4xf32>
    %1 = vector.extract_strided_slice %0 {offsets = [0, 0], sizes = [1, 1], strides = [1, 1]} : vector<1x4xf32> to vector<1x1xf32>
    %c0_1 = arith.constant 0 : index
    %c0_2 = arith.constant 0 : index
    %2 = vector.load %arg2[%c0_1, %c0_2] : memref<4x128xf32, #tpu.memory_space<vmem>>, vector<1x128xf32>
    %3 = vector.broadcast %1 : vector<1x1xf32> to vector<1x128xf32>
    %4 = arith.mulf %3, %2 : vector<1x128xf32>
    %5 = vector.extract_strided_slice %0 {offsets = [0, 1], sizes = [1, 1], strides = [1, 1]} : vector<1x4xf32> to vector<1x1xf32>
    %c1 = arith.constant 1 : index
    %c0_3 = arith.constant 0 : index
    %6 = vector.load %arg2[%c1, %c0_3] : memref<4x128xf32, #tpu.memory_space<vmem>>, vector<1x128xf32>
    %7 = vector.broadcast %5 : vector<1x1xf32> to vector<1x128xf32>
    %8 = arith.mulf %7, %6 : vector<1x128xf32>
    %9 = arith.addf %4, %8 : vector<1x128xf32>
    %10 = vector.extract_strided_slice %0 {offsets = [0, 2], sizes = [1, 1], strides = [1, 1]} : vector<1x4xf32> to vector<1x1xf32>
    %c2 = arith.constant 2 : index
    %c0_4 = arith.constant 0 : index
    %11 = vector.load %arg2[%c2, %c0_4] : memref<4x128xf32, #tpu.memory_space<vmem>>, vector<1x128xf32>
    %12 = vector.broadcast %10 : vector<1x1xf32> to vector<1x128xf32>
    %13 = arith.mulf %12, %11 : vector<1x128xf32>
    %14 = arith.addf %9, %13 : vector<1x128xf32>
    %15 = vector.extract_strided_slice %0 {offsets = [0, 3], sizes = [1, 1], strides = [1, 1]} : vector<1x4xf32> to vector<1x1xf32>
    %c3 = arith.constant 3 : index
    %c0_5 = arith.constant 0 : index
    %16 = vector.load %arg2[%c3, %c0_5] : memref<4x128xf32, #tpu.memory_space<vmem>>, vector<1x128xf32>
    %17 = vector.broadcast %15 : vector<1x1xf32> to vector<1x128xf32>
    %18 = arith.mulf %17, %16 : vector<1x128xf32>
    %19 = arith.addf %14, %18 : vector<1x128xf32>
    %c0_6 = arith.constant 0 : index
    %c0_7 = arith.constant 0 : index
    %20 = vector.load %arg3[%c0_6, %c0_7] : memref<1x128xf32, #tpu.memory_space<vmem>>, vector<1x128xf32>
    %21 = arith.addf %19, %20 : vector<1x128xf32>
    %22 = math.sin %21 : vector<1x128xf32>
    %c0_8 = arith.constant 0 : index
    %c0_9 = arith.constant 0 : index
    %23 = vector.load %arg4[%c0_8, %c0_9] : memref<1x128xf32, #tpu.memory_space<vmem>>, vector<1x128xf32>
    tpu.vector_store %arg4[%c0_8, %c0_9], %22 {strides = array<i32>} : memref<1x128xf32, #tpu.memory_space<vmem>>, vector<1x128xf32>,
    return
  }
  func.func @transform_0(%arg0: i32) -> (i32, i32) {
    %c0_i32 = arith.constant 0 : i32
    %c0_i32_0 = arith.constant 0 : i32
    return %arg0, %c0_i32 : i32, i32
  }
  func.func @transform_1(%arg0: i32) -> (i32, i32) {
    %c0_i32 = arith.constant 0 : i32
    %c0_i32_0 = arith.constant 0 : i32
    %c0_i32_1 = arith.constant 0 : i32
    return %c0_i32, %c0_i32_0 : i32, i32
  }
  func.func @transform_2(%arg0: i32) -> (i32, i32) {
    %c0_i32 = arith.constant 0 : i32
    %c0_i32_0 = arith.constant 0 : i32
    %c0_i32_1 = arith.constant 0 : i32
    return %c0_i32, %c0_i32_0 : i32, i32
  }
  func.func @transform_3(%arg0: i32) -> (i32, i32) {
    %c0_i32 = arith.constant 0 : i32
    %c0_i32_0 = arith.constant 0 : i32
    return %arg0, %c0_i32 : i32, i32
  }
}

</mosaic_0001>

<bundles_post_ra>
// kernel: tpu_custom_call.1
= control target key start
LH: loop header
LB: loop body
LE: loop exit
PB: predicated region body
PF: predicated region fallthrough
CT: control target
= control target key end

     0   :  { %8 = vsyncpa [#allocation3], 0  ;;  %s457_s0 = inlined_call_operand.hbm [shape: f32[1,4], index: 0, kind: input, shape index: {}]   ;;  %s458_s1 = inlined_call_operand.hbm [shape: f32[4,128], index: 1, kind: input, shape index: {}]   ;;  %s459_s2 = inlined_call_operand.vmem [shape: f32[1,128], index: 2, kind: input, shape index: {}]   ;;  %s460_s3 = inlined_call_operand.hbm [shape: f32[1,128], index: 3, kind: output, shape index: {}]  }
   0x1   :  { %9 = vsyncpa [#allocation6], 0 }
   0x2   :  { %10 = vsyncpa [#allocation4], 0  ;;  %s16_s14 = sshll.u32 %s457_s0, 4  ;;  %s351_s15 = smov [#allocation2]   ;;  %s17_s14 = int_to_ptr.hbm [resolvable:$true] %s16_s14 }
   0x3   :  { %s18_s16 = sshll.u32 %s351_s15, 4  ;;  %s27_s19 = sshll.u32 %s458_s1, 4  ;;  %s19_s16 = int_to_ptr.vmem [resolvable:$true] %s18_s16  ;;  %s28_s19 = int_to_ptr.hbm [resolvable:$true] %s27_s19 }
   0x4   :  { %21 = dma.hbm_to_vmem [thread:$0]  %s17_s14, 16, %s19_s16, [#allocation3]  }
   0x5   :  { %s352_s20 = smov [#allocation5]  }
   0x6   :  { %s29_s21 = sshll.u32 %s352_s20, 4  ;;  %s30_s21 = int_to_ptr.vmem [resolvable:$true] %s29_s21 }
   0x7   :  { %32 = dma.hbm_to_vmem [thread:$0]  %s28_s19, 64, %s30_s21, [#allocation6]  }
   0x8   :  { %345 = dma.done.wait [#allocation3], 16  }
   0x9   :  { %346 = vsyncadd [#allocation3], 4294967280 }
   0xa   :  { %347 = dma.done.wait [#allocation6], 64  }
   0xb   :  { %348 = vsyncadd [#allocation6], 4294967232  ;;  %v353_v0 = vmov 0   ;;  %v354_v1 = vmov 2   ;;  %v43_v2 = vld [vmem:[#allocation2] sm:$0x1] }
   0xc   :  { %268 = vset.pattern.permute.xlu0 %v353_v0  ;;  %270 = vset.pattern.permute.xlu1 %v354_v1  ;;  %v355_v3 = vmov 1   ;;  %v356_v4 = vmov 3   ;;  %v44_v8 = vld [vmem:[#allocation5] sm:$0x1]  ;;  %v52_v9 = vld [vmem:[#allocation5 + $0x1] sm:$0x1] }
   0xd   :  { %47 = vperm.xlu0 %268, %v43_v2   ;;  %62 = vperm.xlu1 %270, %v43_v2   ;;  %v60_v15 = vld [vmem:[#allocation5 + $0x2] sm:$0x1]  ;;  %v68_v16 = vld [vmem:[#allocation5 + $0x3] sm:$0x1]  ;;  %v76_v23 = vld [vmem:[%s459_s2] sm:$0x1] }
   0xe   :  { %v357_v37 = vmov 683565275   ;;  %v358_v39 = vmov 2475754826   ;;  %v359_v42 = vmov 2131351028  }
   0xf   :  { %v360_v45 = vmov 2102212464   ;;  %v361_v48 = vmov 920167782   ;;  %v362_v51 = vmov 1326507024  }
  0x10   :  { %s363_s2 = smov [#allocation7]   ;;  %s241_s25 = sshll.u32 %s460_s3, 4  ;;  %s242_s25 = int_to_ptr.hbm [resolvable:$true] %s241_s25 }
  0x11   :  { %s239_s22 = sshll.u32 %s363_s2, 4  ;;  %s240_s22 = int_to_ptr.vmem [resolvable:$true] %s239_s22 }
  0x15   :  { %269 = vset.pattern.permute.xlu0 %v355_v3  ;;  %271 = vset.pattern.permute.xlu1 %v356_v4 }
  0x16   :  { %54 = vperm.xlu0 %269, %v43_v2   ;;  %70 = vperm.xlu1 %271, %v43_v2  }
  0x1e   :  { %272 = vset.pattern.permute.xlu0 %v356_v4 }
  0x7f   :  { %v48_v5 = vpop.permute.xlu0 %47  ;;  %v63_v6 = vpop.permute.xlu1 %62 }
  0x80   :  { %v50_v7 = vperm.slane %v48_v5, 0  ;;  %v65_v12 = vperm.slane %v63_v6, 0 }
  0x82   :  { %v51_v17 = vmul.f32 %v50_v7, %v44_v8  ;;  %v66_v19 = vmul.f32 %v65_v12, %v60_v15 }
  0x88   :  { %v55_v10 = vpop.permute.xlu0 %54  ;;  %v71_v11 = vpop.permute.xlu1 %70 }
  0x89   :  { %v57_v13 = vperm.slane %v55_v10, 0  ;;  %v73_v14 = vperm.slane %v71_v11, 0 }
  0x8b   :  { %v58_v18 = vmul.f32 %v57_v13, %v52_v9  ;;  %v74_v21 = vmul.f32 %v73_v14, %v68_v16 }
  0x8d   :  { %v59_v20 = vadd.f32 %v58_v18, %v51_v17 }
  0x8f   :  { %v67_v22 = vadd.f32 %v66_v19, %v59_v20 }
  0x91   :  { %v75_v24 = vadd.f32 %v74_v21, %v67_v22 }
  0x93   :  { %v394_v25 = vadd.f32 %v76_v23, %v75_v24 }
  0x95   :  { %v81_v26 = vand.u32 2139095040, %v394_v25  ;;  %v78_v29 = vand.u32 2147483647, %v394_v25  ;;  %vm80_vm12 = vcmp.lt.s32.totalorder %v394_v25, 0 }
  0x97   :  { %v82_v27 = vshrl.u32 %v81_v26, 23  ;;  %v85_v32 = vand.u32 8388607, %v78_v29  ;;  %vm79_vm13 = vcmp.le.f32.partialorder %v78_v29, 0.7853982 }
  0x99   :  { %v252_v28 = vadd.s32 4294967169, %v82_v27  ;;  %v86_v36 = vor.u32 8388608, %v85_v32 }
  0x9b   :  { %v88_v30 = vadd.s32 1, %v252_v28  ;;  %v411_v58 = vshll.u32 %v86_v36, 8 }
  0x9d   :  { %vm89_vm0 = vcmp.gt.s32.totalorder %v88_v30, 0  ;;  %v127_v4 = vand.u32 65535, %v411_v58  ;;  %v128_v5 = vshrl.u32 %v411_v58, 16 }
  0x9e   :  { %v90_v31 = vsel %vm89_vm0, %v88_v30, 0 }
  0x9f   :  { %v92_v33 = vand.u32 31, %v90_v31  ;;  %v402_v35 = vshrl.u32 %v90_v31, 5 }
  0xa1   :  { %v400_v34 = vsub.s32 32, %v92_v33  ;;  %v95_v38 = vshll.u32 %v357_v37, %v92_v33  ;;  %v98_v40 = vshll.u32 %v358_v39, %v92_v33  ;;  %v101_v44 = vshll.u32 %v359_v42, %v92_v33 }
  0xa2   :  { %v104_v47 = vshll.u32 %v360_v45, %v92_v33  ;;  %v107_v50 = vshll.u32 %v361_v48, %v92_v33  ;;  %vm110_vm1 = vcmp.lt.s32.totalorder %v402_v35, 1  ;;  %vm113_vm2 = vcmp.lt.s32.totalorder %v402_v35, 4 }
  0xa3   :  { %v96_v41 = vshrl.u32 %v358_v39, %v400_v34  ;;  %v99_v43 = vshrl.u32 %v359_v42, %v400_v34  ;;  %v102_v46 = vshrl.u32 %v360_v45, %v400_v34  ;;  %v105_v49 = vshrl.u32 %v361_v48, %v400_v34 }
  0xa4   :  { %v108_v52 = vshrl.u32 %v362_v51, %v400_v34  ;;  %vm112_vm3 = vcmp.lt.s32.totalorder %v402_v35, 3  ;;  %vm111_vm4 = vcmp.lt.s32.totalorder %v402_v35, 2  ;;  %v94_v32 = vshrl.u32 %v357_v37, %v400_v34 }
  0xa5   :  { %v97_v53 = vor.u32 %v96_v41, %v95_v38  ;;  %v100_v54 = vor.u32 %v99_v43, %v98_v40  ;;  %v103_v55 = vor.u32 %v102_v46, %v101_v44  ;;  %v106_v56 = vor.u32 %v105_v49, %v104_v47 }
  0xa6   :  { %v109_v57 = vor.u32 %v108_v52, %v107_v50 }
  0xa7   :  { %v118_v59 = vsel %vm110_vm1, %v97_v53, %v100_v54  ;;  %v122_v60 = vsel %vm110_vm1, %v100_v54, %v103_v55  ;;  %v119_v61 = vsel %vm113_vm2, %v106_v56, 920167782  ;;  %v115_v28 = vsel %vm113_vm2, %v103_v55, 2102212464 }
  0xa8   :  { %v123_v62 = vsel %vm113_vm2, %v109_v57, 1326507024  ;;  %v120_v63 = vsel %vm112_vm3, %v103_v55, %v119_v61  ;;  %v114_v41 = vsel %vm110_vm1, %v94_v32, %v97_v53  ;;  %v116_v42 = vsel %vm112_vm3, %v100_v54, %v115_v28 }
  0xa9   :  { %v124_v1 = vsel %vm112_vm3, %v106_v56, %v123_v62  ;;  %v121_v2 = vsel %vm111_vm4, %v118_v59, %v120_v63  ;;  %v117_v34 = vsel %vm111_vm4, %v114_v41, %v116_v42  ;;  %vm221_vm1 = vweird.f32 %v394_v25 }
  0xaa   :  { %v125_v3 = vsel %vm111_vm4, %v122_v60, %v124_v1  ;;  %v151_v8 = vand.u32 65535, %v121_v2  ;;  %v152_v9 = vshrl.u32 %v121_v2, 16  ;;  %v171_v49 = vmul.u32 %v411_v58, %v117_v34 }
  0xab   :  { %v129_v6 = vand.u32 65535, %v125_v3  ;;  %v130_v7 = vshrl.u32 %v125_v3, 16 }
  0xac   :  { %v154_v12 = vmul.u32 %v152_v9, %v127_v4  ;;  %v155_v13 = vmul.u32 %v151_v8, %v128_v5  ;;  %v153_v17 = vmul.u32 %v151_v8, %v127_v4  ;;  %v156_v21 = vmul.u32 %v152_v9, %v128_v5 }
  0xad   :  { %v132_v10 = vmul.u32 %v130_v7, %v127_v4  ;;  %v133_v11 = vmul.u32 %v129_v6, %v128_v5  ;;  %v131_v14 = vmul.u32 %v129_v6, %v127_v4  ;;  %v134_v16 = vmul.u32 %v130_v7, %v128_v5 }
  0xae   :  { %v157_v18 = vshll.u32 %v154_v12, 16  ;;  %v159_v23 = vshll.u32 %v155_v13, 16  ;;  %v158_v39 = vshrl.u32 %v154_v12, 16  ;;  %v160_v45 = vshrl.u32 %v155_v13, 16 }
  0xaf   :  { %v135_v15 = vshll.u32 %v132_v10, 16  ;;  %v137_v19 = vshll.u32 %v133_v11, 16  ;;  %v136_v33 = vshrl.u32 %v132_v10, 16  ;;  %v138_v43 = vshrl.u32 %v133_v11, 16 }
  0xb0   :  { %vm161_vm6 = vc.u32 %v153_v17, %v157_v18  ;;  %v163_v24 = vadd.s32 %v157_v18, %v153_v17 }
  0xb1   :  { %vm139_vm5 = vc.u32 %v131_v14, %v135_v15  ;;  %v141_v20 = vadd.s32 %v135_v15, %v131_v14  ;;  %v162_v27 = vsel %vm161_vm6, 1, %v353_v0 }
  0xb2   :  { %v140_v22 = vsel %vm139_vm5, 1, %v353_v0  ;;  %v164_v31 = vadd.s32 %v162_v27, %v156_v21  ;;  %vm165_vm8 = vc.u32 %v163_v24, %v159_v23  ;;  %v167_v48 = vadd.s32 %v163_v24, %v159_v23 }
  0xb3   :  { %v142_v26 = vadd.s32 %v140_v22, %v134_v16  ;;  %vm143_vm7 = vc.u32 %v141_v20, %v137_v19  ;;  %v166_v38 = vsel %vm165_vm8, 1, %v353_v0 }
  0xb4   :  { %v144_v30 = vsel %vm143_vm7, 1, %v353_v0  ;;  %v168_v40 = vadd.s32 %v166_v38, %v164_v31 }
  0xb5   :  { %v146_v36 = vadd.s32 %v144_v30, %v142_v26 }
  0xb6   :  { %v169_v46 = vadd.s32 %v168_v40, %v158_v39 }
  0xb7   :  { %v147_v44 = vadd.s32 %v146_v36, %v136_v33 }
  0xb8   :  { %v170_v37 = vadd.s32 %v169_v46, %v160_v45 }
  0xb9   :  { %v148_v47 = vadd.s32 %v147_v44, %v138_v43 }
  0xba   :  { %v174_v0 = vadd.s32 1, %v170_v37 }
  0xbb   :  { %vm173_vm9 = vc.u32 %v148_v47, %v167_v48  ;;  %v172_v35 = vadd.s32 %v167_v48, %v148_v47 }
  0xbc   :  { %v175_v50 = vsel %vm173_vm9, %v174_v0, %v170_v37 }
  0xbd   :  { %v176_v51 = vadd.s32 %v175_v50, %v171_v49 }
  0xbf   :  { %v177_v52 = vadd.s32 536870912, %v176_v51 }
  0xc1   :  { %v178_v53 = vshrl.u32 %v177_v52, 30 }
  0xc3   :  { %v179_v55 = vshll.u32 %v178_v53, 30  ;;  %v202_v11 = vsub.s32 4, %v178_v53 }
  0xc5   :  { %v180_v54 = vsub.s32 %v176_v51, %v179_v55  ;;  %v203_v16 = vsel %vm80_vm12, %v202_v11, %v178_v53 }
  0xc6   :  { %v205_v19 = vsel %vm79_vm13, 0, %v203_v16 }
  0xc7   :  { %vm181_vm10 = vcmp.lt.s32.totalorder %v180_v54, 0  ;;  %v182_v56 = vsub.s32 0, %v180_v54  ;;  %v222_v24 = vadd.s32 3, %v205_v19 }
  0xc9   :  { %v183_v57 = vsel %vm181_vm10, %v182_v56, %v180_v54  ;;  %v223_v30 = vand.u32 3, %v222_v24 }
  0xca   :  { %v184_v59 = vclz %v183_v57 }
  0xcb   :  { %vm225_vm14 = vcmp.eq.s32.totalorder %v223_v30, 0  ;;  %vm228_vm15 = vcmp.eq.s32.totalorder %v223_v30, 2  ;;  %vm224_vm0 = vcmp.lt.s32.totalorder %v223_v30, 2 }
  0xcc   :  { %v253_v60 = vadd.s32 4294967294, %v184_v59 }
  0xce   :  { %vm254_vm11 = vcmp.lt.s32.totalorder %v253_v60, 0 }
  0xcf   :  { %v187_v61 = vsel %vm254_vm11, 0, %v253_v60 }
  0xd0   :  { %v188_v62 = vsub.s32 32, %v187_v61  ;;  %v192_v63 = vsub.s32 4294967266, %v187_v61  ;;  %v189_v1 = vshll.u32 %v180_v54, %v187_v61 }
  0xd2   :  { %v190_v2 = vshrl.u32 %v172_v35, %v188_v62  ;;  %v193_v3 = vadd.s32 127, %v192_v63 }
  0xd4   :  { %v191_v58 = vor.u32 %v190_v2, %v189_v1  ;;  %v194_v4 = vshll.u32 %v193_v3, 23 }
  0xd6   :  { %v195_v5 = vor.u32 4788187, %v194_v4  ;;  %v198_v7 = vcvt.s32.f32 %v191_v58 }
  0xd8   :  { %v196_v6 = vand.u32 2147483647, %v195_v5 }
  0xda   :  { %v199_v8 = vmul.f32 %v198_v7, %v196_v6 }
  0xdc   :  { %v200_v9 = vxor.u32 2147483648, %v199_v8 }
  0xde   :  { %v201_v10 = vsel %vm80_vm12, %v200_v9, %v199_v8 }
  0xdf   :  { %v204_v12 = vsel %vm79_vm13, %v394_v25, %v201_v10 }
  0xe0   :  { %v206_v13 = vmul.f32 %v204_v12, %v204_v12 }
  0xe2   :  { %v207_v14 = vmul.f32 -0.001358992, %v206_v13  ;;  %v214_v15 = vmul.f32 -0.00019511016, %v206_v13 }
  0xe4   :  { %v208_v17 = vadd.f32 0.041655596, %v207_v14  ;;  %v215_v18 = vadd.f32 0.008332121, %v214_v15 }
  0xe6   :  { %v209_v20 = vmul.f32 %v208_v17, %v206_v13  ;;  %v216_v21 = vmul.f32 %v215_v18, %v206_v13 }
  0xe8   :  { %v210_v22 = vadd.f32 -0.4999988, %v209_v20  ;;  %v217_v23 = vadd.f32 -0.16666654, %v216_v21 }
  0xea   :  { %v211_v26 = vmul.f32 %v210_v22, %v206_v13  ;;  %v218_v27 = vmul.f32 %v217_v23, %v206_v13 }
  0xec   :  { %v212_v28 = vadd.f32 1.0, %v211_v26  ;;  %v219_v29 = vadd.f32 1.0, %v218_v27 }
  0xee   :  { %v220_v31 = vmul.f32 %v219_v29, %v204_v12  ;;  %v229_v32 = vxor.u32 2147483648, %v212_v28 }
  0xf0   :  { %v226_v33 = vxor.u32 2147483648, %v220_v31  ;;  %v230_v38 = vsel %vm228_vm15, %v229_v32, %v220_v31 }
  0xf2   :  { %v227_v36 = vsel %vm225_vm14, %v212_v28, %v226_v33 }
  0xf3   :  { %v231_v39 = vsel %vm224_vm0, %v227_v36, %v230_v38 }
  0xf4   :  { %v232_v40 = vsel %vm221_vm1, nan, %v231_v39 }
  0xf5   :  { %233 = vst [vmem:[#allocation7] sm:$0x1] %v232_v40 }
  0xf6   :  { %244 = dma.vmem_to_hbm [thread:$0]  %s240_s22, 16, %s242_s25, [#allocation4]  }
  0xf7   :  { %349 = dma.done.wait [#allocation4], 16  }
  0xf8   :  { %350 = vsyncadd [#allocation4], 4294967280 }
  0xf9   :  { %249 = vsyncpa [#allocation3], 1 }
  0xfa   :  { %250 = vsyncpa [#allocation6], 1 }
  0xfb   :  { %251 = vsyncpa [#allocation4], 1 }

</bundles_post_ra>
